<compile_context>
chip_gen: v5e
topology: v5e:2x2
jax: 0.10.0
libtpu: 0.0.40
codegen_flags: <defaults>
</compile_context>

<pallas_src>
import functools

import jax
import jax.numpy as jnp
from jax.experimental import pallas as pl
from jax.experimental.pallas import tpu as pltpu


def _round_up(x, m):
    return (x + m - 1) // m * m


def _conv2d_kernel(x_ref, w_ref, b_ref, o_ref, patch_ref, *, K, stride, c_blk, Wq):
    """One (batch, C_out-tile) grid step.

    x_ref:     (stride*stride*c_blk, L)  flattened stride-phase planes (lane padded)
    w_ref:     (TCO, K*K*c_blk)          folded weights for this C_out tile
    b_ref:     (TCO, 1)                  bias column
    o_ref:     (TCO, N)                  lane-dense flat output tile (N % 128 == 0)
    patch_ref: (K*K*c_blk, N)            VMEM scratch holding the im2col patch
    """
    n = o_ref.shape[-1]

    # Assemble the im2col patch.  Every tap is a static, unit-stride lane window
    # of one stride-phase plane (see wrapper) -- cheap copies, no gather/relayout.
    for kh in range(K):
        for kw in range(K):
            tap = kh * K + kw
            phase = (kh % stride) * stride + (kw % stride)
            off = (kh // stride) * Wq + (kw // stride)
            patch_ref[tap * c_blk:(tap + 1) * c_blk, :] = (
                x_ref[phase * c_blk:(phase + 1) * c_blk, off:off + n])

    # Single MXU matmul folding all K*K taps into the contraction dimension.
    acc = jnp.dot(w_ref[...], patch_ref[...], preferred_element_type=jnp.float32)
    acc = acc + b_ref[...].astype(jnp.float32)
    o_ref[...] = acc.astype(o_ref.dtype)


def conv2d_pallas(x, weight, bias=None, *, stride=1, padding=0):
    """NCHW conv2d. x: (B, C_in, H, W); weight: (C_out, C_in, K, K); bias: (C_out,)."""
    B, C_in, H, W = x.shape
    C_out, _, K, _ = weight.shape
    s = int(stride)
    out_h = (H + 2 * padding - K) // s + 1
    out_w = (W + 2 * padding - K) // s + 1

    # ----------------- layout plumbing (XLA glue, outside the kernel) -----------------
    c_in_p = _round_up(C_in, 8)            # sublane-aligned channels
    c_out_p = _round_up(C_out, 8)
    tco = min(c_out_p, 128)                # C_out tile (sublane dim of the matmul)
    c_out_p = _round_up(c_out_p, tco)

    x_pad = jnp.pad(
        x, ((0, 0), (0, c_in_p - C_in), (padding, padding), (padding, padding)))

    # Space-to-depth over the stride: phase (ph, pw) holds x_pad[..., ph::s, pw::s],
    # so every (kh, kw) tap becomes a unit-stride window inside one phase plane.
    q = (K - 1) // s
    Hq, Wq = out_h + q, out_w + q
    planes = []
    for ph in range(s):
        for pw in range(s):
            plane = x_pad[:, :, ph::s, pw::s][:, :, :Hq, :Wq]
            plane = jnp.pad(plane, ((0, 0), (0, 0),
                                    (0, Hq - plane.shape[2]),
                                    (0, Wq - plane.shape[3])))
            planes.append(plane)
    # (B, s*s*c_in_p, Hq*Wq): flattened spatial -> lane axis (done once, in XLA).
    x_ph = jnp.stack(planes, axis=1).reshape(B, s * s * c_in_p, Hq * Wq)

    # Lane-dense matmul N dim (multiple of 128).  Junk columns (padded rows /
    # extra lanes) only ever read zero padding and are sliced away afterwards.
    N = _round_up(out_h * Wq, 128)
    max_off = q * Wq + q
    L = _round_up(max_off + N, 128)
    x_flat = jnp.pad(x_ph, ((0, 0), (0, 0), (0, L - Hq * Wq)))
    P = s * s * c_in_p
    kkc = K * K * c_in_p

    # Weight folded to (C_out_p, K*K*C_in_p), tap-major to match the patch rows.
    w_p = jnp.pad(weight, ((0, c_out_p - C_out), (0, c_in_p - C_in), (0, 0), (0, 0)))
    w_folded = jnp.transpose(w_p, (0, 2, 3, 1)).reshape(c_out_p, kkc)

    if bias is None:
        bias = jnp.zeros((C_out,), x.dtype)
    b_col = jnp.pad(bias, (0, c_out_p - C_out)).reshape(c_out_p, 1).astype(x.dtype)

    kernel = functools.partial(_conv2d_kernel, K=K, stride=s, c_blk=c_in_p, Wq=Wq)

    itemsize = jnp.dtype(x.dtype).itemsize
    cost = pl.CostEstimate(
        flops=2 * B * C_out * C_in * K * K * out_h * out_w,
        transcendentals=0,
        bytes_accessed=itemsize * (x_flat.size + w_folded.size + b_col.size
                                   + B * c_out_p * N))

    out_flat = pl.pallas_call(
        kernel,
        out_shape=jax.ShapeDtypeStruct((B, c_out_p, N), x.dtype),
        grid=(B, c_out_p // tco),
        in_specs=[
            # same block across the C_out axis -> fetched once per batch element
            pl.BlockSpec((None, P, L), lambda b, c: (b, 0, 0)),
            pl.BlockSpec((tco, kkc), lambda b, c: (c, 0)),
            pl.BlockSpec((tco, 1), lambda b, c: (c, 0)),
        ],
        out_specs=pl.BlockSpec((None, tco, N), lambda b, c: (b, c, 0)),
        scratch_shapes=[pltpu.VMEM((kkc, N), x.dtype)],
        compiler_params=pltpu.CompilerParams(
            dimension_semantics=("parallel", "parallel"),
            vmem_limit_bytes=32 * 1024 * 1024),
        cost_estimate=cost,
    )(x_flat, w_folded, b_col)

    # Drop channel / lane padding and per-row junk columns; restore NCHW.
    out = out_flat[:, :C_out, :out_h * Wq]
    out = out.reshape(B, C_out, out_h, Wq)[:, :, :, :out_w]
    return out


if __name__ == "__main__":
    # Module config consistent with TritonConv2d(in_ch, out_ch, k, stride, padding)
    B, C_in, C_out = 2, 4, 8
    H = W = 16
    K, STRIDE, PAD = 3, 1, 1

    key = jax.random.PRNGKey(0)
    kx, kw = jax.random.split(key)
    x = jax.random.normal(kx, (B, C_in, H, W), dtype=jnp.float32)

    # kaiming_normal_(mode='fan_out', nonlinearity='relu'): std = sqrt(2 / (C_out*K*K))
    fan_out = C_out * K * K
    std = (2.0 / fan_out) ** 0.5
    weight = jax.random.normal(kw, (C_out, C_in, K, K), dtype=jnp.float32) * std
    bias = jnp.zeros((C_out,), dtype=jnp.float32)

    out = conv2d_pallas(x, weight, bias, stride=STRIDE, padding=PAD)
    out = jax.block_until_ready(out)

    ref = jax.lax.conv_general_dilated(
        x, weight,
        window_strides=(STRIDE, STRIDE),
        padding=[(PAD, PAD), (PAD, PAD)],
        dimension_numbers=("NCHW", "OIHW", "NCHW"),
    ) + bias.reshape(1, C_out, 1, 1)
    assert out.shape == (B, C_out, H, W)
    assert jnp.allclose(out, ref, rtol=1e-4, atol=1e-4)

    # Secondary check: strided conv exercises the space-to-depth phase path.
    out2 = jax.block_until_ready(conv2d_pallas(x, weight, bias, stride=2, padding=1))
    ref2 = jax.lax.conv_general_dilated(
        x, weight, window_strides=(2, 2), padding=[(1, 1), (1, 1)],
        dimension_numbers=("NCHW", "OIHW", "NCHW"),
    ) + bias.reshape(1, C_out, 1, 1)
    assert out2.shape == ref2.shape
    assert jnp.allclose(out2, ref2, rtol=1e-4, atol=1e-4)

    print("KERNEL_OK")
</pallas_src>

<mosaic_0001>
module attributes {stable_mosaic.version = 11 : i64} {
  func.func @_conv2d_kernel(%arg0: i32, %arg1: i32, %arg2: memref<1x8x512xf32, #tpu.memory_space<vmem>>, %arg3: memref<8x72xf32, #tpu.memory_space<vmem>>, %arg4: memref<8x1xf32, #tpu.memory_space<vmem>>, %arg5: memref<1x8x384xf32, #tpu.memory_space<vmem>>, %arg6: memref<72x384xf32, #tpu.memory_space<vmem>>) attributes {dimension_semantics = [#tpu.dimension_semantics<parallel>, #tpu.dimension_semantics<parallel>], iteration_bounds = array<i64: 2, 1>, scalar_prefetch = 0 : i64, scratch_operands = 1 : i64, tpu.core_type = #tpu.core_type<tc>, window_params = [{transform_indices = @transform_0, window_bounds = array<i64: 1, 8, 512>}, {transform_indices = @transform_1, window_bounds = array<i64: 8, 72>}, {transform_indices = @transform_2, window_bounds = array<i64: 8, 1>}, {transform_indices = @transform_3, window_bounds = array<i64: 1, 8, 384>}]} {
    %c0 = arith.constant 0 : index
    %c0_0 = arith.constant 0 : index
    %c0_1 = arith.constant 0 : index
    %0 = vector.load %arg2[%c0, %c0_0, %c0_1] : memref<1x8x512xf32, #tpu.memory_space<vmem>>, vector<1x8x384xf32>
    %1 = vector.shape_cast %0 : vector<1x8x384xf32> to vector<8x384xf32>
    %c0_2 = arith.constant 0 : index
    %c0_3 = arith.constant 0 : index
    %2 = vector.load %arg6[%c0_2, %c0_3] : memref<72x384xf32, #tpu.memory_space<vmem>>, vector<8x384xf32>
    tpu.vector_store %arg6[%c0_2, %c0_3], %1 {strides = array<i32>} : memref<72x384xf32, #tpu.memory_space<vmem>>, vector<8x384xf32>,
    %c0_4 = arith.constant 0 : index
    %c0_5 = arith.constant 0 : index
    %c1 = arith.constant 1 : index
    %3 = vector.load %arg2[%c0_4, %c0_5, %c1] : memref<1x8x512xf32, #tpu.memory_space<vmem>>, vector<1x8x384xf32>
    %4 = vector.shape_cast %3 : vector<1x8x384xf32> to vector<8x384xf32>
    %c8 = arith.constant 8 : index
    %c0_6 = arith.constant 0 : index
    %5 = vector.load %arg6[%c8, %c0_6] : memref<72x384xf32, #tpu.memory_space<vmem>>, vector<8x384xf32>
    tpu.vector_store %arg6[%c8, %c0_6], %4 {strides = array<i32>} : memref<72x384xf32, #tpu.memory_space<vmem>>, vector<8x384xf32>,
    %c0_7 = arith.constant 0 : index
    %c0_8 = arith.constant 0 : index
    %c2 = arith.constant 2 : index
    %6 = vector.load %arg2[%c0_7, %c0_8, %c2] : memref<1x8x512xf32, #tpu.memory_space<vmem>>, vector<1x8x384xf32>
    %7 = vector.shape_cast %6 : vector<1x8x384xf32> to vector<8x384xf32>
    %c16 = arith.constant 16 : index
    %c0_9 = arith.constant 0 : index
    %8 = vector.load %arg6[%c16, %c0_9] : memref<72x384xf32, #tpu.memory_space<vmem>>, vector<8x384xf32>
    tpu.vector_store %arg6[%c16, %c0_9], %7 {strides = array<i32>} : memref<72x384xf32, #tpu.memory_space<vmem>>, vector<8x384xf32>,
    %c0_10 = arith.constant 0 : index
    %c0_11 = arith.constant 0 : index
    %c18 = arith.constant 18 : index
    %9 = vector.load %arg2[%c0_10, %c0_11, %c18] : memref<1x8x512xf32, #tpu.memory_space<vmem>>, vector<1x8x384xf32>
    %10 = vector.shape_cast %9 : vector<1x8x384xf32> to vector<8x384xf32>
    %c24 = arith.constant 24 : index
    %c0_12 = arith.constant 0 : index
    %11 = vector.load %arg6[%c24, %c0_12] : memref<72x384xf32, #tpu.memory_space<vmem>>, vector<8x384xf32>
    tpu.vector_store %arg6[%c24, %c0_12], %10 {strides = array<i32>} : memref<72x384xf32, #tpu.memory_space<vmem>>, vector<8x384xf32>,
    %c0_13 = arith.constant 0 : index
    %c0_14 = arith.constant 0 : index
    %c19 = arith.constant 19 : index
    %12 = vector.load %arg2[%c0_13, %c0_14, %c19] : memref<1x8x512xf32, #tpu.memory_space<vmem>>, vector<1x8x384xf32>
    %13 = vector.shape_cast %12 : vector<1x8x384xf32> to vector<8x384xf32>
    %c32 = arith.constant 32 : index
    %c0_15 = arith.constant 0 : index
    %14 = vector.load %arg6[%c32, %c0_15] : memref<72x384xf32, #tpu.memory_space<vmem>>, vector<8x384xf32>
    tpu.vector_store %arg6[%c32, %c0_15], %13 {strides = array<i32>} : memref<72x384xf32, #tpu.memory_space<vmem>>, vector<8x384xf32>,
    %c0_16 = arith.constant 0 : index
    %c0_17 = arith.constant 0 : index
    %c20 = arith.constant 20 : index
    %15 = vector.load %arg2[%c0_16, %c0_17, %c20] : memref<1x8x512xf32, #tpu.memory_space<vmem>>, vector<1x8x384xf32>
    %16 = vector.shape_cast %15 : vector<1x8x384xf32> to vector<8x384xf32>
    %c40 = arith.constant 40 : index
    %c0_18 = arith.constant 0 : index
    %17 = vector.load %arg6[%c40, %c0_18] : memref<72x384xf32, #tpu.memory_space<vmem>>, vector<8x384xf32>
    tpu.vector_store %arg6[%c40, %c0_18], %16 {strides = array<i32>} : memref<72x384xf32, #tpu.memory_space<vmem>>, vector<8x384xf32>,
    %c0_19 = arith.constant 0 : index
    %c0_20 = arith.constant 0 : index
    %c36 = arith.constant 36 : index
    %18 = vector.load %arg2[%c0_19, %c0_20, %c36] : memref<1x8x512xf32, #tpu.memory_space<vmem>>, vector<1x8x384xf32>
    %19 = vector.shape_cast %18 : vector<1x8x384xf32> to vector<8x384xf32>
    %c48 = arith.constant 48 : index
    %c0_21 = arith.constant 0 : index
    %20 = vector.load %arg6[%c48, %c0_21] : memref<72x384xf32, #tpu.memory_space<vmem>>, vector<8x384xf32>
    tpu.vector_store %arg6[%c48, %c0_21], %19 {strides = array<i32>} : memref<72x384xf32, #tpu.memory_space<vmem>>, vector<8x384xf32>,
    %c0_22 = arith.constant 0 : index
    %c0_23 = arith.constant 0 : index
    %c37 = arith.constant 37 : index
    %21 = vector.load %arg2[%c0_22, %c0_23, %c37] : memref<1x8x512xf32, #tpu.memory_space<vmem>>, vector<1x8x384xf32>
    %22 = vector.shape_cast %21 : vector<1x8x384xf32> to vector<8x384xf32>
    %c56 = arith.constant 56 : index
    %c0_24 = arith.constant 0 : index
    %23 = vector.load %arg6[%c56, %c0_24] : memref<72x384xf32, #tpu.memory_space<vmem>>, vector<8x384xf32>
    tpu.vector_store %arg6[%c56, %c0_24], %22 {strides = array<i32>} : memref<72x384xf32, #tpu.memory_space<vmem>>, vector<8x384xf32>,
    %c0_25 = arith.constant 0 : index
    %c0_26 = arith.constant 0 : index
    %c38 = arith.constant 38 : index
    %24 = vector.load %arg2[%c0_25, %c0_26, %c38] : memref<1x8x512xf32, #tpu.memory_space<vmem>>, vector<1x8x384xf32>
    %25 = vector.shape_cast %24 : vector<1x8x384xf32> to vector<8x384xf32>
    %c64 = arith.constant 64 : index
    %c0_27 = arith.constant 0 : index
    %26 = vector.load %arg6[%c64, %c0_27] : memref<72x384xf32, #tpu.memory_space<vmem>>, vector<8x384xf32>
    tpu.vector_store %arg6[%c64, %c0_27], %25 {strides = array<i32>} : memref<72x384xf32, #tpu.memory_space<vmem>>, vector<8x384xf32>,
    %c0_28 = arith.constant 0 : index
    %c0_29 = arith.constant 0 : index
    %27 = vector.load %arg3[%c0_28, %c0_29] : memref<8x72xf32, #tpu.memory_space<vmem>>, vector<8x72xf32>
    %c0_30 = arith.constant 0 : index
    %c0_31 = arith.constant 0 : index
    %28 = vector.load %arg6[%c0_30, %c0_31] : memref<72x384xf32, #tpu.memory_space<vmem>>, vector<72x384xf32>
    %cst = arith.constant dense<0.000000e+00> : vector<8x384xf32>
    %29 = tpu.matmul %27, %28, %cst {dimension_numbers = #tpu.dot_dimension_numbers<[1], [0], [0], [1], [0, 0, 1, 1], [], []>} : vector<8x72xf32>, vector<72x384xf32>, vector<8x384xf32> -> vector<8x384xf32>
    %c0_32 = arith.constant 0 : index
    %c0_33 = arith.constant 0 : index
    %30 = vector.load %arg4[%c0_32, %c0_33] : memref<8x1xf32, #tpu.memory_space<vmem>>, vector<8x1xf32>
    %31 = vector.broadcast %30 : vector<8x1xf32> to vector<8x384xf32>
    %32 = arith.addf %29, %31 : vector<8x384xf32>
    %c0_34 = arith.constant 0 : index
    %c0_35 = arith.constant 0 : index
    %c0_36 = arith.constant 0 : index
    %33 = vector.load %arg5[%c0_34, %c0_35, %c0_36] : memref<1x8x384xf32, #tpu.memory_space<vmem>>, vector<1x8x384xf32>
    %34 = vector.shape_cast %33 : vector<1x8x384xf32> to vector<8x384xf32>
    %35 = vector.shape_cast %32 : vector<8x384xf32> to vector<1x8x384xf32>
    tpu.vector_store %arg5[%c0_34, %c0_35, %c0_36], %35 {strides = array<i32>} : memref<1x8x384xf32, #tpu.memory_space<vmem>>, vector<1x8x384xf32>,
    return
  }
  func.func @transform_0(%arg0: i32, %arg1: i32) -> (i32, i32, i32) {
    %c0_i32 = arith.constant 0 : i32
    %c0_i32_0 = arith.constant 0 : i32
    %c0_i32_1 = arith.constant 0 : i32
    return %arg0, %c0_i32, %c0_i32_0 : i32, i32, i32
  }
  func.func @transform_1(%arg0: i32, %arg1: i32) -> (i32, i32) {
    %c0_i32 = arith.constant 0 : i32
    %c0_i32_0 = arith.constant 0 : i32
    return %arg1, %c0_i32 : i32, i32
  }
  func.func @transform_2(%arg0: i32, %arg1: i32) -> (i32, i32) {
    %c0_i32 = arith.constant 0 : i32
    %c0_i32_0 = arith.constant 0 : i32
    return %arg1, %c0_i32 : i32, i32
  }
  func.func @transform_3(%arg0: i32, %arg1: i32) -> (i32, i32, i32) {
    %c0_i32 = arith.constant 0 : i32
    %c0_i32_0 = arith.constant 0 : i32
    return %arg0, %arg1, %c0_i32 : i32, i32, i32
  }
}

</mosaic_0001>

<bundles_post_ra>
// kernel: tpu_custom_call.1
= control target key start
LH: loop header
LB: loop body
LE: loop exit
PB: predicated region body
PF: predicated region fallthrough
CT: control target
= control target key end

     0   :  { %8 = vsyncpa [#allocation4], 0  ;;  %s1169_s0 = inlined_call_operand.hbm [shape: f32[2,8,512], index: 0, kind: input, shape index: {}]   ;;  %s1170_s1 = inlined_call_operand.vmem [shape: f32[8,72], index: 1, kind: input, shape index: {}]   ;;  %s1171_s2 = inlined_call_operand.vmem [shape: f32[8,1], index: 2, kind: input, shape index: {}]   ;;  %s1172_s3 = inlined_call_operand.hbm [shape: f32[2,8,384], index: 3, kind: output, shape index: {}]  }
   0x1   :  { %10 = vsyncpa [#allocation4 + $0x1], 0 }
   0x2   :  { %11 = vsyncpa [#allocation5], 0 }
   0x3   :  { %13 = vsyncpa [#allocation5 + $0x1], 0  ;;  %s998_s12 = smov 0   ;;  %s1000_s13 = smov 0  }
   0x4   :  { %s1002_s14 = smov 0   ;;  %s1004_s15 = smov 0  }
   0x5   :  { %s1006_s16 = smov 0   ;;  %s1008_s17 = smov 0  }
   0x6 LB: > { %s682_s18 = sadd.s32 4294967295, %s967_s17   ;;  %s683_s19 = sadd.s32 4294967294, %s967_s17   ;;  %s967_s17 = sphi %s1008_s17, %s19_s17   ;;  %s963_s16 = sphi %s1006_s16, %s1181_s16   ;;  %s959_s15 = sphi %s1004_s15, %s1180_s15   ;;  %s955_s14 = sphi %s1002_s14, %s1179_s14   ;;  %s951_s13 = sphi %s1000_s13, %s1178_s13   ;;  %s947_s12 = sphi %s998_s12, %s1177_s12  }
   0x7   : > { %s31_s20 = sadd.s32 1, %s963_s16  ;;  %s38_s21 = sadd.s32 1, %s955_s14 }
   0x8   : > { %p33_p0 = scmp.ge.s32.totalorder %s31_s20, 2  ;;  %p45_p1 = scmp.ne.s32.totalorder %s955_s14, %s951_s13 }
   0x9   : > { %p46_p2 = scmp.eq.s32.totalorder %s967_s17, 0  ;;  %p51_p3 = scmp.ne.s32.totalorder %s951_s13, %s947_s12 }
   0xa   : > { %s1183_s20 = smov (%p33_p0, %s31_s20), 0  ;;  %p52_p5 = scmp.eq.s32.totalorder %s682_s18, 0 }
   0xb   : > { %p1039_p4 = por %p46_p2, %p45_p1  ;;  %s35_s23 = ssub.s32 %s963_s16, %s1183_s20 }
   0xc   : > { %p129_p6 = scmp.eq.s32.totalorder %s682_s18, 1  ;;  %p36_p7 = scmp.eq.s32.totalorder %s35_s23, 0 }
   0xd   : > { %p1045_p8 = por %p52_p5, %p51_p3  ;;  %p135_p10 = scmp.eq.s32.totalorder %s683_s19, 1 }
   0xe   : > { %p1049_p9 = por %p129_p6, %p45_p1  ;;  %p687_p12 = scmp.ge.s32.totalorder %s967_s17, 2 }
   0xf   : > { %s1054_s26 = scalar_select %p36_p7, %s955_s14, %s38_s21  }
  0x10   : > { %p1056_p11 = por %p135_p10, %p51_p3  ;;  %p714_p13 = scmp.lt.s32.totalorder %s967_s17, 2 }
  0x11   : > { %s169_s28 = sand.u32 1, %s955_s14   ;;  %s699_s30 = sshll.u32 %s963_s16, 5 }
  0x12   : > { %s688_s29 = sshll.u32 %s169_s28, 5  ;;  %s178_s6 = scalar_lea.hbm %s1169_s0, %s699_s30 }
  0x13   : > { %s173_s7 = scalar_lea.vmem [#allocation3], %s688_s29  ;;  %s180_s9 = sshll.u32 %s178_s6, 4  ;;  %s181_s9 = int_to_ptr.hbm [resolvable:$true] %s180_s9 }
  0x14   : > { %s182_s8 = sshll.u32 %s173_s7, 4  ;;  %p707_p0 = pnand %p714_p13, %p1039_p4  ;;  %s183_s8 = int_to_ptr.vmem [resolvable:$true] %s182_s8 }
  0x15   : > { %p691_p1 = scmp.ge.s32.totalorder %s967_s17, 1  ;;  %p187_p2 = scmp.lt.s32.totalorder %s967_s17, 3 }
  0x16   : > { %s170_s10 = scalar_lea.sflag [#allocation4], %s169_s28 }
  0x17   : > { %709 = dma.hbm_to_vmem [thread:$0]  (!%p707_p0), %s181_s9, 512, %s183_s8, %s170_s10  }
  0x18   : > { %p188_p3 = pnand %p691_p1, %p187_p2 }
  0x19   : > { %s1072_s11 = sand.u32 (!%p188_p3), 1, %s951_s13  }
  0x1a   : > { %191 = sbr.rel (%p188_p3) target bundleno = 328 (0x148), region = 32  ;;  %s692_s18 = sshll.u32 (!%p188_p3), %s1072_s11, 5 }
  0x1b   : > { %s194_s19 = scalar_lea.sflag (!%p188_p3), [#allocation4], %s1072_s11  ;;  %s197_s21 = scalar_lea.vmem (!%p188_p3), [#allocation3], %s692_s18 }
  0x1f   : > { %938 = dma.done.wait (%p1045_p8), %s194_s19, 512  }
  0x20   : > { %940 = vsyncadd (%p1045_p8), %s194_s19, 4294966784  ;;  %v1080_v0 = vld [vmem:[%s197_s21 + $0x10] sm:$0xff]  ;;  %v428_v1 = vld [vmem:[%s197_s21 + $0x18] sm:$0xff]  ;;  %s969_s22 = smov 90   ;;  %s970_s23 = smov 92   ;;  %vm441_vm0 = vcmask 736256  }
  0x21   : > { %v1082_v2 = vld [vmem:[%s197_s21] sm:$0xff]  ;;  %v773_v3 = vpack.i.bf16 %v428_v1, %v1080_v0  ;;  %v1085_v4 = vld [vmem:[%s197_s21 + $0x8] sm:$0xff]  ;;  %s971_s28 = smov 91   ;;  %s972_s24 = smov 108   ;;  %vm415_vm1 = vcmask 744448   ;;  %vm389_vm2 = vcmask 752640  }
  0x22   : > { %v793_v5 = vpack.i.bf16 %v1085_v4, %v1082_v2  ;;  %s973_s29 = smov 109   ;;  %s974_s30 = smov 110   ;;  %vm363_vm3 = vcmask 883712   ;;  %vm337_vm4 = vcmask 891904   ;;  %v479_v33 = vld [vmem:[%s1171_s2] sm:$0xff]  ;;  %vm311_vm5 = vcmask 900096  }
  0x23   : > { %774 = vrot.lane.b32.xlu0 %v773_v3, %s969_s22  ;;  %784 = vrot.lane.b32.xlu1 %v773_v3, %s970_s23  ;;  %s975_s4 = smov 126   ;;  %s976_s5 = smov 127   ;;  %v977_v37 = vmov 0   ;;  %vm285_vm6 = vcmask 1031168   ;;  %vm259_vm7 = vcmask 1039360   ;;  %v451_v60 = vld [vmem:[%s1170_s1] sm:$0xff] }
  0x24   : > { %794 = vrot.lane.b32.xlu2 %v793_v5, %s969_s22  ;;  %853 = vset.pattern.permute.xlu1 %v977_v37  ;;  %vm485_vm8 = vcmask 588800   ;;  %s700_s10 = smul.u32 24, %s1072_s11  ;;  %s905_s6 = scalar_lea.hbm %s1172_s3, 48 }
  0x25   : > { %854 = vset.pattern.permute.xlu0 %v977_v37  ;;  %s701_s18 = smul.u32 24, %s959_s15 }
  0x26   : > { %s228_s19 = scalar_lea.vmem [#allocation6], %s700_s10 }
  0x2b   : > { %779 = vrot.lane.b32.xlu0 %v773_v3, %s971_s28  ;;  %789 = vrot.lane.b32.xlu1 %v773_v3, %s972_s24 }
  0x2c   : > { %799 = vrot.lane.b32.xlu2 %v773_v3, %s973_s29 }
  0x33   : > { %804 = vrot.lane.b32.xlu0 %v793_v5, %s971_s28  ;;  %809 = vrot.lane.b32.xlu1 %v773_v3, %s974_s30  ;;  %s568_s28 = sshll.u32 %s228_s19, 4  ;;  %s569_s28 = int_to_ptr.vmem [resolvable:$true] %s568_s28 }
  0x34   : > { %814 = vrot.lane.b32.xlu2 %v793_v5, %s970_s23  ;;  %s566_s23 = scalar_lea.hbm %s1172_s3, %s701_s18 }
  0x3b   : > { %824 = vrot.lane.b32.xlu1 %v793_v5, %s972_s24  ;;  %819 = vrot.lane.b32.xlu0 %v773_v3, %s975_s4  ;;  %s570_s24 = sshll.u32 %s566_s23, 4  ;;  %s571_s24 = int_to_ptr.hbm [resolvable:$true] %s570_s24 }
  0x3c   : > { %829 = vrot.lane.b32.xlu2 %v773_v3, %s976_s5  ;;  %s899_s15 = sshra.s32 %s571_s24, 4  ;;  %s900_s15 = int_to_ptr.hbm [resolvable:$true] %s899_s15 }
  0x3d   : > { %p906_p7 = scmp.lt.s32.totalorder %s900_s15, %s1172_s3 }
  0x43   : > { %839 = vrot.lane.b32.xlu1 %v793_v5, %s974_s30  ;;  %834 = vrot.lane.b32.xlu0 %v793_v5, %s973_s29  ;;  %s553_s29 = scalar_lea.sflag [#allocation5], %s1072_s11  ;;  %s901_s30 = scalar_lea.hbm %s900_s15, 24 }
  0x44   : > { %844 = vrot.lane.b32.xlu2 %v793_v5, %s975_s4  ;;  %p902_p4 = scmp.ne.s32.totalorder %s900_s15, %s901_s30  ;;  %p907_p8 = scmp.lt.s32.totalorder %s905_s6, %s901_s30 }
  0x46   : > { %p903_p5 = pnand %p902_p4, %p1049_p9  ;;  %p908_p10 = por %p907_p8, %p906_p7 }
  0x48   : > { %p904_p6 = pneg %p903_p5 }
  0x4a   : > { %p909_p13 = pnand %p908_p10, %p904_p6 }
  0x4b   : > { %849 = vrot.lane.b32.xlu0 %v793_v5, %s976_s5  ;;  %482 = vperm.xlu1 %853, %v479_v33  }
  0x7e   : > { %v795_v6 = vpop.permute.xlu2 %794 }
  0x7f   : > { %v797_v7 = vunpack.i.h.bf16 %v795_v6  ;;  %v796_v8 = vunpack.i.l.bf16 %v795_v6 }
  0x81   : > { %v442_v9 = vsel %vm441_vm0, %v796_v8, %v797_v7 }
  0x82   : > { %496 = vmatpush.msra.mxu0 %v442_v9 }
  0x86   : > { %v1089_v14 = vpop.permute.xlu2 %799 }
  0x87   : > { %v802_v25 = vunpack.i.h.bf16 %v1089_v14  ;;  %v801_v26 = vunpack.i.l.bf16 %v1089_v14 }
  0x89   : > { %v340_v32 = vsel %vm337_vm4, %v801_v26, %v802_v25 }
  0x8e   : > { %v815_v28 = vpop.permute.xlu2 %814 }
  0x8f   : > { %v816_v31 = vunpack.i.l.bf16 %v815_v28  ;;  %v817_v34 = vunpack.i.h.bf16 %v815_v28 }
  0x91   : > { %v390_v45 = vsel %vm389_vm2, %v816_v31, %v817_v34 }
  0x95   : > { %v775_v10 = vpop.permute.xlu0 %774  ;;  %v785_v11 = vpop.permute.xlu1 %784 }
  0x96   : > { %v777_v12 = vunpack.i.h.bf16 %v775_v10  ;;  %v776_v13 = vunpack.i.l.bf16 %v775_v10  ;;  %v787_v17 = vunpack.i.h.bf16 %v785_v11  ;;  %v786_v18 = vunpack.i.l.bf16 %v785_v11  ;;  %v830_v46 = vpop.permute.xlu2 %829 }
  0x97   : > { %v832_v48 = vunpack.i.h.bf16 %v830_v46  ;;  %v831_v49 = vunpack.i.l.bf16 %v830_v46 }
  0x98   : > { %v443_v15 = vsel %vm441_vm0, %v797_v7, %v776_v13  ;;  %v444_v16 = vsel %vm441_vm0, %v776_v13, %v777_v12  ;;  %v392_v29 = vsel %vm389_vm2, %v786_v18, %v787_v17  ;;  %v391_v47 = vsel %vm389_vm2, %v817_v34, %v786_v18 }
  0x99   : > { %516 = vmatpush.msra.mxu1 %v443_v15  ;;  %536 = vmatpush.msra.mxu2 %v444_v16  ;;  %v262_v59 = vsel %vm259_vm7, %v831_v49, %v832_v48 }
  0x9d   : > { %v780_v19 = vpop.permute.xlu0 %779  ;;  %v790_v20 = vpop.permute.xlu1 %789 }
  0x9e   : > { %v782_v21 = vunpack.i.h.bf16 %v780_v19  ;;  %v781_v22 = vunpack.i.l.bf16 %v780_v19  ;;  %v792_v23 = vunpack.i.h.bf16 %v790_v20  ;;  %v791_v24 = vunpack.i.l.bf16 %v790_v20  ;;  %v845_v61 = vpop.permute.xlu2 %844 }
  0x9f   : > { %v846_v62 = vunpack.i.l.bf16 %v845_v61  ;;  %v847_v8 = vunpack.i.h.bf16 %v845_v61 }
  0xa0   : > { %v418_v27 = vsel %vm415_vm1, %v781_v22, %v782_v21  ;;  %v366_v30 = vsel %vm363_vm3, %v791_v24, %v792_v23 }
  0xa1   : > { %537 = vmatpush.msra.mxu2 %v418_v27 }
  0xa3   : > { %538 = vmatpush.msra.mxu2 %v392_v29 }
  0xa5   : > { %v805_v35 = vpop.permute.xlu0 %804  ;;  %539 = vmatpush.msra.mxu2 %v366_v30  ;;  %v810_v36 = vpop.permute.xlu1 %809 }
  0xa6   : > { %v807_v38 = vunpack.i.h.bf16 %v805_v35  ;;  %v806_v39 = vunpack.i.l.bf16 %v805_v35  ;;  %v812_v40 = vunpack.i.h.bf16 %v810_v36  ;;  %v811_v41 = vunpack.i.l.bf16 %v810_v36 }
  0xa7   : > { %540 = vmatpush.msra.mxu2 %v340_v32 }
  0xa8   : > { %v416_v42 = vsel %vm415_vm1, %v806_v39, %v807_v38  ;;  %v417_v43 = vsel %vm415_vm1, %v807_v38, %v781_v22  ;;  %v314_v44 = vsel %vm311_vm5, %v811_v41, %v812_v40 }
  0xa9   : > { %497 = vmatpush.msra.mxu0 %v416_v42  ;;  %517 = vmatpush.msra.mxu1 %v417_v43 }
  0xaa   : > { %541 = vmatpush.msra.mxu2 %v314_v44 }
  0xab   : > { %518 = vmatpush.msra.mxu1 %v391_v47  ;;  %498 = vmatpush.msra.mxu0 %v390_v45 }
  0xad   : > { %v825_v50 = vpop.permute.xlu1 %824  ;;  %v820_v51 = vpop.permute.xlu0 %819 }
  0xae   : > { %v827_v52 = vunpack.i.h.bf16 %v825_v50  ;;  %v826_v53 = vunpack.i.l.bf16 %v825_v50  ;;  %v822_v54 = vunpack.i.h.bf16 %v820_v51  ;;  %v821_v55 = vunpack.i.l.bf16 %v820_v51 }
  0xb0   : > { %v365_v56 = vsel %vm363_vm3, %v827_v52, %v791_v24  ;;  %v288_v57 = vsel %vm285_vm6, %v821_v55, %v822_v54  ;;  %v364_v58 = vsel %vm363_vm3, %v826_v53, %v827_v52  ;;  %v287_v13 = vsel %vm285_vm6, %v847_v8, %v821_v55 }
  0xb1   : > { %519 = vmatpush.msra.mxu1 %v365_v56  ;;  %542 = vmatpush.msra.mxu2 %v288_v57 }
  0xb2   : > { %499 = vmatpush.msra.mxu0 %v364_v58 }
  0xb3   : > { %543 = vmatpush.msra.mxu2 %v262_v59 }
  0xb5   : > { %v840_v63 = vpop.permute.xlu1 %839  ;;  %v835_v1 = vpop.permute.xlu0 %834  ;;  %544 = vmatpush.msra.mxu2 %v1080_v0  ;;  %v286_v0 = vsel %vm285_vm6, %v846_v62, %v847_v8 }
  0xb6   : > { %v842_v3 = vunpack.i.h.bf16 %v840_v63  ;;  %v841_v5 = vunpack.i.l.bf16 %v840_v63  ;;  %v837_v6 = vunpack.i.h.bf16 %v835_v1  ;;  %v836_v7 = vunpack.i.l.bf16 %v835_v1  ;;  %695 = vmatmul.msk.f32.vlgmr.msra.gmra.mxu2 %vm485_vm8, %v451_v60 }
  0xb8   : > { %v338_v9 = vsel %vm337_vm4, %v836_v7, %v837_v6  ;;  %v339_v10 = vsel %vm337_vm4, %v837_v6, %v801_v26  ;;  %v312_v11 = vsel %vm311_vm5, %v841_v5, %v842_v3  ;;  %v313_v12 = vsel %vm311_vm5, %v842_v3, %v811_v41 }
  0xb9   : > { %500 = vmatpush.msra.mxu0 %v338_v9  ;;  %520 = vmatpush.msra.mxu1 %v339_v10 }
  0xbb   : > { %521 = vmatpush.msra.mxu1 %v313_v12  ;;  %501 = vmatpush.msra.mxu0 %v312_v11 }
  0xbd   : > { %522 = vmatpush.msra.mxu1 %v287_v13  ;;  %v850_v15 = vpop.permute.xlu0 %849  ;;  %502 = vmatpush.msra.mxu0 %v286_v0  ;;  %v483_v19 = vpop.permute.xlu1 %482 }
  0xbe   : > { %v852_v14 = vunpack.i.h.bf16 %v850_v15  ;;  %v851_v16 = vunpack.i.l.bf16 %v850_v15 }
  0xc0   : > { %v260_v17 = vsel %vm259_vm7, %v851_v16, %v852_v14  ;;  %v261_v18 = vsel %vm259_vm7, %v852_v14, %v831_v49 }
  0xc1   : > { %503 = vmatpush.msra.mxu0 %v260_v17  ;;  %523 = vmatpush.msra.mxu1 %v261_v18 }
  0xc3   : > { %504 = vmatpush.msra.mxu0 %v1082_v2  ;;  %524 = vmatpush.msra.mxu1 %v1085_v4 }
  0xc4   : > { %693 = vmatmul.msk.f32.vlgmr.msra.gmra.mxu0 %vm485_vm8, %v451_v60  ;;  %694 = vmatmul.msk.f32.vlgmr.msra.gmra.mxu1 %vm485_vm8, %v451_v60 }
 0x139   : > { %v546_v20 = vpop.f32.mrf.mxu2 }
 0x13a   : > { %v547_v21 = vadd.f32 %v546_v20, %v483_v19 }
 0x13c   : > { %551 = vst [vmem:[%s228_s19 + $0x10] sm:$0xff] %v547_v21 }
 0x141   : > { %v506_v2 = vpop.f32.mrf.mxu0  ;;  %v526_v4 = vpop.f32.mrf.mxu1 }
 0x142   : > { %v507_v22 = vadd.f32 %v506_v2, %v483_v19  ;;  %v527_v23 = vadd.f32 %v526_v4, %v483_v19 }
 0x144   : > { %549 = vst [vmem:[%s228_s19] sm:$0xff] %v507_v22 }
 0x145   : > { %550 = vst [vmem:[%s228_s19 + $0x8] sm:$0xff] %v527_v23 }
 0x146   : > { %912 = shalt.err (!%p909_p13)
}
 0x147   : > { %704 = dma.vmem_to_hbm [thread:$0]  (%p1049_p9), %s569_s28, 384, %s571_s24, %s553_s29  }
 0x148 PF: > { %s582_s11 = sand.u32 1, %s947_s12   ;;  %p711_p0 = pnand %p687_p12, %p1056_p11 }
 0x149   : > { %s583_s9 = scalar_lea.sflag [#allocation5], %s582_s11 }
 0x14a   : > { %p712_p1 = pneg %p711_p0 }
 0x14c   : > { %942 = dma.done.wait (%p712_p1), %s583_s9, 384  }
 0x14d   : > { %944 = vsyncadd (%p712_p1), %s583_s9, 4294966912  ;;  %s19_s17 = sadd.s32 1, %s967_s17   ;;  %s1177_s12 = smov %s951_s13 }
 0x14e   : > { %p16_p2 = scmp.ge.s32.totalorder %s19_s17, 4   ;;  %s1178_s13 = smov %s955_s14 }
 0x14f   : > { %s1179_s14 = smov %s1054_s26  ;;  %s1180_s15 = smov %s963_s16 }
 0x150   : > { %s1181_s16 = smov %s1183_s20  ;;  %18 = sbr.rel (!%p16_p2) target bundleno = 6 (0x6), region = 83 }
 0x155   :  { %589 = vsyncpa [#allocation4], 1 }
 0x156   :  { %591 = vsyncpa [#allocation4 + $0x1], 1 }
 0x157   :  { %592 = vsyncpa [#allocation5], 1 }
 0x158   :  { %594 = vsyncpa [#allocation5 + $0x1], 1 }

</bundles_post_ra>
